<compile_context>
chip_gen: v6e
topology: v6e:2x2x1
jax: 0.10.0
libtpu: 0.0.40
codegen_flags: <defaults>
</compile_context>

<pallas_src>
import jax
import jax.numpy as jnp
from jax.experimental import pallas as pl
from jax.experimental.pallas import tpu as pltpu


def _cdiv(a, b):
    return (a + b - 1) // b


def _round_up(x, m):
    return _cdiv(x, m) * m


def mlp_kernel(x_ref, w1_ref, b1_ref, w2_ref, b2_ref, w3_ref, b3_ref, o_ref):
    # One (tile_rows, 128) slab = tile_rows*16 batch elements; fully lane-dense.
    x = x_ref[...].astype(jnp.bfloat16)                                   # (tr, 128)
    h1 = jnp.dot(x, w1_ref[...], preferred_element_type=jnp.float32)
    h1 = jnp.maximum(h1 + b1_ref[...], 0.0).astype(jnp.bfloat16)          # (tr, 256)
    h2 = jnp.dot(h1, w2_ref[...], preferred_element_type=jnp.float32)
    h2 = jnp.maximum(h2 + b2_ref[...], 0.0).astype(jnp.bfloat16)          # (tr, 128)
    z = jnp.dot(h2, w3_ref[...], preferred_element_type=jnp.float32) + b3_ref[...]
    # sigmoid(z) == 0.5*(tanh(z/2)+1): single EUP transcendental per element.
    o_ref[...] = 0.5 * (jnp.tanh(0.5 * z) + 1.0)                          # (tr, 16)


def _expand_params(params, lanes=128):
    """Block-diagonal weights so 16 batch rows are processed per lane-row.

    With J = lanes // in_dim batch rows interleaved on the lane axis
    (lane = J_index*in_dim + feature), the per-row Linear y = x @ W.T + b becomes
    a lane-dense matmul against a (J*in, J*out) block-diagonal matrix.
    """
    w1, b1 = params["w1"], params["b1"]          # (16, 8), (16,)
    w2, b2 = params["w2"], params["b2"]          # (8, 16), (8,)
    w3, b3 = params["w3"], params["b3"]          # (1, 8),  (1,)
    in_dim = w1.shape[1]
    assert lanes % in_dim == 0
    J = lanes // in_dim
    eye = jnp.eye(J, dtype=jnp.float32)

    def blockdiag(w):                            # w: (out, in) PyTorch orientation
        out_d, in_d = w.shape
        # [j, f, j', o] = delta_{jj'} * w[o, f]  ->  (J*in, J*out)
        big = eye[:, None, :, None] * w.T[None, :, None, :]
        return big.reshape(J * in_d, J * out_d).astype(jnp.bfloat16)

    def tile_bias(b):                            # b: (out,) -> (1, J*out), f32
        return jnp.tile(b.reshape(-1), J).reshape(1, -1).astype(jnp.float32)

    return (blockdiag(w1), tile_bias(b1),
            blockdiag(w2), tile_bias(b2),
            blockdiag(w3), tile_bias(b3), J)


def obstacle_detector_forward(x, params, *, tile_b_cap=32768):
    """x: (B, 8) float32 -> (B, 1) float32, matching SimpleObstacleDetector.forward."""
    B, in_dim = x.shape
    w1b, b1b, w2b, b2b, w3b, b3b, J = _expand_params(params)
    assert in_dim * J == 128
    out_dim = params["w3"].shape[0]

    # Tile sizing: large batch tiles amortize the ~0.35us/step grid overhead
    # (per-lane VMEM footprint is ~150-260 B, so a 32K-lane tile is well under the
    # 32 MiB scoped-VMEM limit requested below on v5e/v6e/v7x).  For big batches
    # use an even number (>=2) of grid steps so the "parallel" batch axis splits
    # cleanly across the two v7x TensorCores.
    n_steps = _cdiv(B, tile_b_cap)
    if B >= 4096:
        n_steps = max(n_steps, 2)
        n_steps += n_steps % 2
    tile_b = _round_up(_cdiv(B, n_steps), 128)   # lane-dense, sublane-aligned tiles
    B_pad = n_steps * tile_b
    tile_rows = tile_b // J                      # multiple of 8 (tile_b mult of 128)

    # Ragged tails are zero-padded (skipped entirely when B divides the tiling,
    # e.g. power-of-two batches).  The (B,8)->(B/J,128) reshape is a free
    # row-major bitcast -- no wrapper-side transpose of x, no extra HBM pass.
    if B_pad != B:
        x = jnp.pad(x, ((0, B_pad - B), (0, 0)))
    x_packed = x.reshape(B_pad // J, J * in_dim)

    def rep(a):  # full-array block, constant index -> resident in VMEM across steps
        return pl.BlockSpec(a.shape, lambda i: (0, 0))

    out_packed = pl.pallas_call(
        mlp_kernel,
        out_shape=jax.ShapeDtypeStruct((B_pad // J, J * out_dim), jnp.float32),
        grid_spec=pltpu.PrefetchScalarGridSpec(
            num_scalar_prefetch=0,
            grid=(n_steps,),
            in_specs=[
                pl.BlockSpec((tile_rows, J * in_dim), lambda i: (i, 0)),  # x slab
                rep(w1b), rep(b1b), rep(w2b), rep(b2b), rep(w3b), rep(b3b),
            ],
            out_specs=pl.BlockSpec((tile_rows, J * out_dim), lambda i: (i, 0)),
        ),
        compiler_params=pltpu.CompilerParams(
            dimension_semantics=("parallel",),
            vmem_limit_bytes=32 * 1024 * 1024,
        ),
    )(x_packed, w1b, b1b, w2b, b2b, w3b, b3b)

    # Free row-major reshape back to the PyTorch (B, 1) output; slice off padding.
    return out_packed.reshape(B_pad, out_dim)[:B]


def init_params(key, input_dim=8):
    """Deterministic synthetic init matching nn.Linear shapes: W (out, in), b (out,)."""
    ks = jax.random.split(key, 6)

    def linear(kw, kb, fan_in, fan_out):
        bound = 1.0 / jnp.sqrt(fan_in)
        w = jax.random.uniform(kw, (fan_out, fan_in), jnp.float32, -bound, bound)
        b = jax.random.uniform(kb, (fan_out,), jnp.float32, -bound, bound)
        return w, b

    w1, b1 = linear(ks[0], ks[1], input_dim, 16)
    w2, b2 = linear(ks[2], ks[3], 16, 8)
    w3, b3 = linear(ks[4], ks[5], 8, 1)
    return {"w1": w1, "b1": b1, "w2": w2, "b2": b2, "w3": w3, "b3": b3}


def reference_forward(x, p):
    h1 = jnp.maximum(x @ p["w1"].T + p["b1"], 0.0)
    h2 = jnp.maximum(h1 @ p["w2"].T + p["b2"], 0.0)
    return jax.nn.sigmoid(h2 @ p["w3"].T + p["b3"])


if __name__ == "__main__":
    key = jax.random.PRNGKey(0)
    kx, kp, kx2 = jax.random.split(key, 3)

    B, input_dim = 64, 8
    x = jax.random.normal(kx, (B, input_dim), jnp.float32)
    params = init_params(kp, input_dim)

    out = jax.block_until_ready(obstacle_detector_forward(x, params))
    ref = reference_forward(x, params)
    assert out.shape == (B, 1)
    # bf16 MXU operands -> compare with a tolerance appropriate for sigmoid outputs
    assert jnp.allclose(out, ref, atol=2e-2, rtol=0.0), float(jnp.max(jnp.abs(out - ref)))

    # ragged batch exercises the zero-pad path
    B2 = 300
    x2 = jax.random.normal(kx2, (B2, input_dim), jnp.float32)
    out2 = jax.block_until_ready(obstacle_detector_forward(x2, params))
    ref2 = reference_forward(x2, params)
    assert out2.shape == (B2, 1)
    assert jnp.allclose(out2, ref2, atol=2e-2, rtol=0.0)

    print("KERNEL_OK")
</pallas_src>

<mosaic_0001>
module attributes {stable_mosaic.version = 11 : i64} {
  func.func @mlp_kernel(%arg0: i32, %arg1: memref<8x128xf32, #tpu.memory_space<vmem>>, %arg2: memref<128x256xbf16, #tpu.memory_space<vmem>>, %arg3: memref<1x256xf32, #tpu.memory_space<vmem>>, %arg4: memref<256x128xbf16, #tpu.memory_space<vmem>>, %arg5: memref<1x128xf32, #tpu.memory_space<vmem>>, %arg6: memref<128x16xbf16, #tpu.memory_space<vmem>>, %arg7: memref<1x16xf32, #tpu.memory_space<vmem>>, %arg8: memref<8x16xf32, #tpu.memory_space<vmem>>) attributes {dimension_semantics = [#tpu.dimension_semantics<parallel>], iteration_bounds = array<i64: 1>, scalar_prefetch = 0 : i64, scratch_operands = 0 : i64, tpu.core_type = #tpu.core_type<tc>, window_params = [{transform_indices = @transform_0, window_bounds = array<i64: 8, 128>}, {pipeline_mode = #tpu.pipeline_mode<synchronous>, transform_indices = @transform_1, window_bounds = array<i64: 128, 256>}, {pipeline_mode = #tpu.pipeline_mode<synchronous>, transform_indices = @transform_2, window_bounds = array<i64: 1, 256>}, {pipeline_mode = #tpu.pipeline_mode<synchronous>, transform_indices = @transform_3, window_bounds = array<i64: 256, 128>}, {pipeline_mode = #tpu.pipeline_mode<synchronous>, transform_indices = @transform_4, window_bounds = array<i64: 1, 128>}, {pipeline_mode = #tpu.pipeline_mode<synchronous>, transform_indices = @transform_5, window_bounds = array<i64: 128, 16>}, {pipeline_mode = #tpu.pipeline_mode<synchronous>, transform_indices = @transform_6, window_bounds = array<i64: 1, 16>}, {transform_indices = @transform_7, window_bounds = array<i64: 8, 16>}]} {
    %c0 = arith.constant 0 : index
    %c0_0 = arith.constant 0 : index
    %0 = vector.load %arg1[%c0, %c0_0] : memref<8x128xf32, #tpu.memory_space<vmem>>, vector<8x128xf32>
    %1 = arith.truncf %0 : vector<8x128xf32> to vector<8x128xbf16>
    %c0_1 = arith.constant 0 : index
    %c0_2 = arith.constant 0 : index
    %2 = vector.load %arg2[%c0_1, %c0_2] : memref<128x256xbf16, #tpu.memory_space<vmem>>, vector<128x256xbf16>
    %cst = arith.constant dense<0.000000e+00> : vector<8x256xf32>
    %3 = tpu.matmul %1, %2, %cst {dimension_numbers = #tpu.dot_dimension_numbers<[1], [0], [0], [1], [0, 0, 1, 1], [], []>} : vector<8x128xbf16>, vector<128x256xbf16>, vector<8x256xf32> -> vector<8x256xf32>
    %c0_3 = arith.constant 0 : index
    %c0_4 = arith.constant 0 : index
    %4 = vector.load %arg3[%c0_3, %c0_4] : memref<1x256xf32, #tpu.memory_space<vmem>>, vector<1x256xf32>
    %5 = vector.broadcast %4 : vector<1x256xf32> to vector<8x256xf32>
    %6 = arith.addf %3, %5 : vector<8x256xf32>
    %cst_5 = arith.constant 0.000000e+00 : f32
    %7 = vector.broadcast %cst_5 : f32 to vector<8x256xf32>
    %8 = arith.maximumf %6, %7 : vector<8x256xf32>
    %9 = arith.truncf %8 : vector<8x256xf32> to vector<8x256xbf16>
    %c0_6 = arith.constant 0 : index
    %c0_7 = arith.constant 0 : index
    %10 = vector.load %arg4[%c0_6, %c0_7] : memref<256x128xbf16, #tpu.memory_space<vmem>>, vector<256x128xbf16>
    %cst_8 = arith.constant dense<0.000000e+00> : vector<8x128xf32>
    %11 = tpu.matmul %9, %10, %cst_8 {dimension_numbers = #tpu.dot_dimension_numbers<[1], [0], [0], [1], [0, 0, 1, 1], [], []>} : vector<8x256xbf16>, vector<256x128xbf16>, vector<8x128xf32> -> vector<8x128xf32>
    %c0_9 = arith.constant 0 : index
    %c0_10 = arith.constant 0 : index
    %12 = vector.load %arg5[%c0_9, %c0_10] : memref<1x128xf32, #tpu.memory_space<vmem>>, vector<1x128xf32>
    %13 = vector.broadcast %12 : vector<1x128xf32> to vector<8x128xf32>
    %14 = arith.addf %11, %13 : vector<8x128xf32>
    %cst_11 = arith.constant 0.000000e+00 : f32
    %15 = vector.broadcast %cst_11 : f32 to vector<8x128xf32>
    %16 = arith.maximumf %14, %15 : vector<8x128xf32>
    %17 = arith.truncf %16 : vector<8x128xf32> to vector<8x128xbf16>
    %c0_12 = arith.constant 0 : index
    %c0_13 = arith.constant 0 : index
    %18 = vector.load %arg6[%c0_12, %c0_13] : memref<128x16xbf16, #tpu.memory_space<vmem>>, vector<128x16xbf16>
    %cst_14 = arith.constant dense<0.000000e+00> : vector<8x16xf32>
    %19 = tpu.matmul %17, %18, %cst_14 {dimension_numbers = #tpu.dot_dimension_numbers<[1], [0], [0], [1], [0, 0, 1, 1], [], []>} : vector<8x128xbf16>, vector<128x16xbf16>, vector<8x16xf32> -> vector<8x16xf32>
    %c0_15 = arith.constant 0 : index
    %c0_16 = arith.constant 0 : index
    %20 = vector.load %arg7[%c0_15, %c0_16] : memref<1x16xf32, #tpu.memory_space<vmem>>, vector<1x16xf32>
    %21 = vector.broadcast %20 : vector<1x16xf32> to vector<8x16xf32>
    %22 = arith.addf %19, %21 : vector<8x16xf32>
    %cst_17 = arith.constant 5.000000e-01 : f32
    %23 = vector.broadcast %cst_17 : f32 to vector<8x16xf32>
    %24 = arith.mulf %23, %22 : vector<8x16xf32>
    %25 = math.tanh %24 : vector<8x16xf32>
    %cst_18 = arith.constant 1.000000e+00 : f32
    %26 = vector.broadcast %cst_18 : f32 to vector<8x16xf32>
    %27 = arith.addf %25, %26 : vector<8x16xf32>
    %cst_19 = arith.constant 5.000000e-01 : f32
    %28 = vector.broadcast %cst_19 : f32 to vector<8x16xf32>
    %29 = arith.mulf %28, %27 : vector<8x16xf32>
    %c0_20 = arith.constant 0 : index
    %c0_21 = arith.constant 0 : index
    %30 = vector.load %arg8[%c0_20, %c0_21] : memref<8x16xf32, #tpu.memory_space<vmem>>, vector<8x16xf32>
    tpu.vector_store %arg8[%c0_20, %c0_21], %29 {strides = array<i32>} : memref<8x16xf32, #tpu.memory_space<vmem>>, vector<8x16xf32>,
    return
  }
  func.func @transform_0(%arg0: i32) -> (i32, i32) {
    %c0_i32 = arith.constant 0 : i32
    %c0_i32_0 = arith.constant 0 : i32
    return %arg0, %c0_i32 : i32, i32
  }
  func.func @transform_1(%arg0: i32) -> (i32, i32) {
    %c0_i32 = arith.constant 0 : i32
    %c0_i32_0 = arith.constant 0 : i32
    %c0_i32_1 = arith.constant 0 : i32
    return %c0_i32, %c0_i32_0 : i32, i32
  }
  func.func @transform_2(%arg0: i32) -> (i32, i32) {
    %c0_i32 = arith.constant 0 : i32
    %c0_i32_0 = arith.constant 0 : i32
    %c0_i32_1 = arith.constant 0 : i32
    return %c0_i32, %c0_i32_0 : i32, i32
  }
  func.func @transform_3(%arg0: i32) -> (i32, i32) {
    %c0_i32 = arith.constant 0 : i32
    %c0_i32_0 = arith.constant 0 : i32
    %c0_i32_1 = arith.constant 0 : i32
    return %c0_i32, %c0_i32_0 : i32, i32
  }
  func.func @transform_4(%arg0: i32) -> (i32, i32) {
    %c0_i32 = arith.constant 0 : i32
    %c0_i32_0 = arith.constant 0 : i32
    %c0_i32_1 = arith.constant 0 : i32
    return %c0_i32, %c0_i32_0 : i32, i32
  }
  func.func @transform_5(%arg0: i32) -> (i32, i32) {
    %c0_i32 = arith.constant 0 : i32
    %c0_i32_0 = arith.constant 0 : i32
    %c0_i32_1 = arith.constant 0 : i32
    return %c0_i32, %c0_i32_0 : i32, i32
  }
  func.func @transform_6(%arg0: i32) -> (i32, i32) {
    %c0_i32 = arith.constant 0 : i32
    %c0_i32_0 = arith.constant 0 : i32
    %c0_i32_1 = arith.constant 0 : i32
    return %c0_i32, %c0_i32_0 : i32, i32
  }
  func.func @transform_7(%arg0: i32) -> (i32, i32) {
    %c0_i32 = arith.constant 0 : i32
    %c0_i32_0 = arith.constant 0 : i32
    return %arg0, %c0_i32 : i32, i32
  }
}

</mosaic_0001>

<bundles_post_ra>
// kernel: tpu_custom_call.1
= control target key start
LH: loop header
LB: loop body
LE: loop exit
PB: predicated region body
PF: predicated region fallthrough
CT: control target
= control target key end

     0   :  { %12 = vsyncpa [#allocation3], 0  ;;  %s835_s0 = inlined_call_operand.vmem [shape: f32[8,128], index: 0, kind: input, shape index: {}]   ;;  %s836_s1 = inlined_call_operand.hbm [shape: bf16[128,256], index: 1, kind: input, shape index: {}]   ;;  %s837_s2 = inlined_call_operand.vmem [shape: f32[1,256], index: 2, kind: input, shape index: {}]   ;;  %s838_s3 = inlined_call_operand.hbm [shape: bf16[256,128], index: 3, kind: input, shape index: {}]   ;;  %s839_s4 = inlined_call_operand.vmem [shape: f32[1,128], index: 4, kind: input, shape index: {}]   ;;  %s840_s5 = inlined_call_operand.vmem [shape: bf16[128,16], index: 5, kind: input, shape index: {}]   ;;  %s841_s6 = inlined_call_operand.vmem [shape: f32[1,16], index: 6, kind: input, shape index: {}]   ;;  %s842_s7 = inlined_call_operand.hbm [shape: f32[8,16], index: 7, kind: output, shape index: {}]  }
   0x1   :  { %13 = vsyncpa [#allocation6], 0 }
   0x2   :  { %14 = vsyncpa [#allocation4], 0  ;;  %s740_s24 = smov [#allocation2]  }
   0x3   :  { %s22_s25 = sshll.u32 %s740_s24, 4  ;;  %s23_s25 = int_to_ptr.vmem [resolvable:$true] %s22_s25 }
   0x4   :  { %s682_s26 = scalar_lea.vmem %s23_s25, 2048  ;;  %p687_p1 = scmp.lt.s32.totalorder %s23_s25, %s23_s25 }
   0x5   :  { %p683_p0 = scmp.ne.s32.totalorder %s23_s25, %s682_s26  ;;  %p688_p2 = scmp.lt.s32.totalorder %s682_s26, %s682_s26 }
   0x7   :  { %p689_p3 = por %p688_p2, %p687_p1 }
   0x9   :  { %p690_p4 = pnand %p689_p3, %p683_p0 }
   0xb   :  { %693 = shalt.err (!%p690_p4)
}
   0xc   :  { %s741_s27 = smov 128   ;;  %s742_s28 = smov 8  }
   0xd   :  { %28 = dma.hbm_to_vmem [thread:$0]  %s836_s1, 2048, %s23_s25, [#allocation3], %s741_s27, %s741_s27, %s742_s28  }
   0xe   :  { %s743_s8 = smov [#allocation5]  }
   0xf   :  { %s36_s9 = sshll.u32 %s743_s8, 4  ;;  %s37_s9 = int_to_ptr.vmem [resolvable:$true] %s36_s9 }
  0x10   :  { %s702_s10 = scalar_lea.vmem %s37_s9, 2048  ;;  %p707_p6 = scmp.lt.s32.totalorder %s37_s9, %s37_s9 }
  0x11   :  { %p703_p5 = scmp.ne.s32.totalorder %s37_s9, %s702_s10  ;;  %p708_p7 = scmp.lt.s32.totalorder %s702_s10, %s702_s10 }
  0x13   :  { %p709_p8 = por %p708_p7, %p707_p6 }
  0x15   :  { %p710_p9 = pnand %p709_p8, %p703_p5 }
  0x17   :  { %713 = shalt.err (!%p710_p9)
}
  0x18   :  { %s744_s11 = smov 64   ;;  %s745_s12 = smov 4  }
  0x19   :  { %42 = dma.hbm_to_vmem [thread:$0]  %s838_s3, 2048, %s37_s9, [#allocation6], %s744_s11, %s744_s11, %s745_s12  }
  0x1a   :  { %734 = dma.done.wait [#allocation3], 2048  }
  0x1b   :  { %735 = vsyncadd [#allocation3], 4294965248 }
  0x1c   :  { %736 = dma.done.wait [#allocation6], 2048  }
  0x1d   :  { %737 = vsyncadd [#allocation6], 4294965248  ;;  %v746_v0 = vmov 0   ;;  %v624_v1 = vld [vmem:[#allocation2 + $0x74] ss:$8 sps:$4 sm:$0xff]   ;;  %v652_v15 = vld [vmem:[#allocation5 + $0x68] sm:$0xff]   ;;  %v76_v41 = vlaneseq }
  0x1e   :  { %198 = vmatprep.mubr.bf16.mxu0 %v746_v0  ;;  %v626_v2 = vld [vmem:[#allocation2 + $0x70] ss:$8 sps:$4 sm:$0xff]   ;;  %166 = vmatprep.subr.bf16.mxu0 %v624_v1  ;;  %v627_v3 = vld [vmem:[#allocation2 + $0x64] ss:$8 sps:$4 sm:$0xff]   ;;  %v629_v4 = vld [vmem:[#allocation2 + $0x60] ss:$8 sps:$4 sm:$0xff]  }
  0x1f   :  { %167 = vmatpush1.bf16.msra.mxu0 %v626_v2  ;;  %v630_v5 = vld [vmem:[#allocation2 + $0x54] ss:$8 sps:$4 sm:$0xff]   ;;  %v632_v6 = vld [vmem:[#allocation2 + $0x50] ss:$8 sps:$4 sm:$0xff]   ;;  %v633_v7 = vld [vmem:[#allocation2 + $0x44] ss:$8 sps:$4 sm:$0xff]  }
  0x20   :  { %168 = vmatprep.subr.bf16.mxu0 %v627_v3  ;;  %v635_v8 = vld [vmem:[#allocation2 + $0x40] ss:$8 sps:$4 sm:$0xff]   ;;  %v636_v9 = vld [vmem:[#allocation2 + $0x34] ss:$8 sps:$4 sm:$0xff]   ;;  %v638_v12 = vld [vmem:[#allocation2 + $0x30] ss:$8 sps:$4 sm:$0xff]  }
  0x21   :  { %v648_v10 = vld [vmem:[#allocation5 + $0x78] sm:$0xff]   ;;  %v650_v13 = vld [vmem:[#allocation5 + $0x70] sm:$0xff]   ;;  %v639_v16 = vld [vmem:[#allocation2 + $0x24] ss:$8 sps:$4 sm:$0xff]   ;;  %v747_v36 = vmov 0.0   ;;  %v77_v42 = vshrl.u32 %v76_v41, 7 }
  0x22   :  { %v649_v11 = vld [vmem:[#allocation5 + $0x38] sm:$0xff]   ;;  %563 = vmatprep.subr.bf16.mxu1 %v648_v10  ;;  %v651_v14 = vld [vmem:[#allocation5 + $0x30] sm:$0xff]   ;;  %v641_v17 = vld [vmem:[#allocation2 + $0x20] ss:$8 sps:$4 sm:$0xff]   ;;  %vm748_vm0 = vmmov 0   ;;  %vm503_vm1 = vcmask 130048  }
  0x23   :  { %169 = vmatpush1.bf16.msra.mxu0 %v629_v4  ;;  %564 = vmatpush3.bf16.msra.mxu1 %v649_v11  ;;  %v653_v18 = vld [vmem:[#allocation5 + $0x28] sm:$0xff]   ;;  %v654_v19 = vld [vmem:[#allocation5 + $0x60] sm:$0xff]   ;;  %v642_v20 = vld [vmem:[#allocation2 + $0x14] ss:$8 sps:$4 sm:$0xff]   ;;  %v78_v43 = vsub.s32 0, %v77_v42  ;;  %v82_v45 = vsub.s32 1, %v77_v42 }
  0x24   :  { %170 = vmatprep.subr.bf16.mxu0 %v630_v5  ;;  %565 = vmatprep.subr.bf16.mxu1 %v650_v13  ;;  %v644_v21 = vld [vmem:[#allocation2 + $0x10] ss:$8 sps:$4 sm:$0xff]   ;;  %v645_v22 = vld [vmem:[#allocation2 + $0x4] ss:$8 sps:$4 sm:$0xff]   ;;  %v647_v26 = vld [vmem:[#allocation2] ss:$8 sps:$4 sm:$0xff]  }
  0x25   :  { %v655_v23 = vld [vmem:[#allocation5 + $0x20] sm:$0xff]   ;;  %v656_v24 = vld [vmem:[#allocation5 + $0x58] sm:$0xff]   ;;  %v658_v28 = vld [vmem:[#allocation5 + $0x50] sm:$0xff]  }
  0x26   :  { %v657_v25 = vld [vmem:[#allocation5 + $0x18] sm:$0xff]   ;;  %v56_v27 = vld [vmem:[%s835_s0] sm:$0xff]  ;;  %v659_v29 = vld [vmem:[#allocation5 + $0x10] sm:$0xff]  }
  0x27   :  { %171 = vmatpush1.bf16.msra.mxu0 %v632_v6  ;;  %566 = vmatpush3.bf16.msra.mxu1 %v651_v14  ;;  %v57_v30 = vpack.c.bf16 %v56_v27, %v56_v27  ;;  %v660_v31 = vld [vmem:[#allocation5 + $0x48] sm:$0xff]   ;;  %v662_v33 = vld [vmem:[#allocation5 + $0x40] sm:$0xff]   ;;  %v664_v35 = vld [vmem:[%s840_s5 + $0x38] sm:$0xff]  }
  0x28   :  { %172 = vmatprep.subr.bf16.mxu0 %v633_v7  ;;  %567 = vmatprep.subr.bf16.mxu1 %v652_v15  ;;  %v661_v32 = vld [vmem:[#allocation5 + $0x8] sm:$0xff]   ;;  %v663_v34 = vld [vmem:[#allocation5] sm:$0xff]   ;;  %v665_v37 = vld [vmem:[%s840_s5 + $0x30] sm:$0xff]  }
  0x29   :  { %v666_v38 = vld [vmem:[%s840_s5 + $0x28] sm:$0xff]   ;;  %v667_v39 = vld [vmem:[%s840_s5 + $0x20] sm:$0xff]   ;;  %v668_v40 = vld [vmem:[%s840_s5 + $0x18] sm:$0xff]  }
  0x2a   :  { %v74_v44 = vld [vmem:[%s837_s2] sm:$0x3]  ;;  %v669_v58 = vld [vmem:[%s840_s5 + $0x10] sm:$0xff]   ;;  %v670_v59 = vld [vmem:[%s840_s5 + $0x8] sm:$0xff]  }
  0x2b   :  { %173 = vmatpush1.bf16.msra.mxu0 %v635_v8  ;;  %568 = vmatpush3.bf16.msra.mxu1 %v653_v18  ;;  %v79_v46 = vrot.slane %v74_v44, %v78_v43  ;;  %v83_v47 = vrot.slane %v74_v44, %v82_v45  ;;  %v671_v60 = vld [vmem:[%s840_s5] sm:$0xff]  }
  0x2c   :  { %174 = vmatprep.subr.bf16.mxu0 %v636_v9  ;;  %569 = vmatprep.subr.bf16.mxu1 %v654_v19  ;;  %v537_v62 = vld [vmem:[%s839_s4] ss:$0 sm:$0xff]  ;;  %s749_s4 = smov [#allocation7]  }
  0x2d   :  { %v554_v6 = vld [vmem:[%s841_s6] ss:$0 sm:$0xff]  ;;  %s511_s5 = sshll.u32 %s749_s4, 4  ;;  %s512_s5 = int_to_ptr.vmem [resolvable:$true] %s511_s5 }
  0x2e   :  { %s714_s12 = scalar_lea.vmem %s512_s5, 128  ;;  %p719_p11 = scmp.lt.s32.totalorder %s512_s5, %s512_s5 }
  0x2f   :  { %175 = vmatpush1.bf16.msra.mxu0 %v638_v12  ;;  %570 = vmatpush3.bf16.msra.mxu1 %v655_v23  ;;  %p715_p10 = scmp.ne.s32.totalorder %s512_s5, %s714_s12  ;;  %p720_p12 = scmp.lt.s32.totalorder %s714_s12, %s714_s12 }
  0x30   :  { %176 = vmatprep.subr.bf16.mxu0 %v639_v16  ;;  %571 = vmatprep.subr.bf16.mxu1 %v656_v24 }
  0x31   :  { %p721_p13 = por %p720_p12, %p719_p11 }
  0x33   :  { %177 = vmatpush1.bf16.msra.mxu0 %v641_v17  ;;  %572 = vmatpush3.bf16.msra.mxu1 %v657_v25  ;;  %p722_p0 = pnand %p721_p13, %p715_p10 }
  0x34   :  { %178 = vmatprep.subr.bf16.mxu0 %v642_v20  ;;  %573 = vmatprep.subr.bf16.mxu1 %v658_v28 }
  0x37   :  { %179 = vmatpush1.bf16.msra.mxu0 %v644_v21  ;;  %574 = vmatpush3.bf16.msra.mxu1 %v659_v29 }
  0x38   :  { %180 = vmatprep.subr.bf16.mxu0 %v645_v22  ;;  %575 = vmatprep.subr.bf16.mxu1 %v660_v31 }
  0x3b   :  { %181 = vmatpush1.bf16.msra.mxu0 %v647_v26  ;;  %576 = vmatpush3.bf16.msra.mxu1 %v661_v32 }
  0x3c   :  { %577 = vmatprep.subr.bf16.mxu1 %v662_v33  ;;  %594 = vmatprep.subr.bf16.mxu0 %v747_v36 }
  0x3e   :  { %199 = vmatmul.mubr.bf16.vlgmr.msra.gmra.mxu0 %v57_v30 }
  0x3f   :  { %578 = vmatpush3.bf16.msra.mxu1 %v663_v34  ;;  %595 = vmatpush3.bf16.msra.mxu0 %v664_v35 }
  0x40   :  { %596 = vmatprep.subr.bf16.mxu0 %v747_v36  ;;  %610 = vmatprep.mubr.msk.bf16.mxu0 %vm748_vm0, %v747_v36 }
  0x43   :  { %597 = vmatpush3.bf16.msra.mxu0 %v665_v37 }
  0x44   :  { %598 = vmatprep.subr.bf16.mxu0 %v747_v36 }
  0x47   :  { %599 = vmatpush3.bf16.msra.mxu0 %v666_v38 }
  0x48   :  { %600 = vmatprep.subr.bf16.mxu0 %v747_v36 }
  0x4b   :  { %601 = vmatpush3.bf16.msra.mxu0 %v667_v39 }
  0x4c   :  { %602 = vmatprep.subr.bf16.mxu0 %v747_v36 }
  0x4f   :  { %603 = vmatpush3.bf16.msra.mxu0 %v668_v40 }
  0x50   :  { %604 = vmatprep.subr.bf16.mxu0 %v747_v36 }
  0x53   :  { %605 = vmatpush3.bf16.msra.mxu0 %v669_v58 }
  0x54   :  { %606 = vmatprep.subr.bf16.mxu0 %v747_v36 }
  0x57   :  { %607 = vmatpush3.bf16.msra.mxu0 %v670_v59 }
  0x58   :  { %608 = vmatprep.subr.bf16.mxu0 %v747_v36 }
  0x5b   :  { %609 = vmatpush3.bf16.msra.mxu0 %v671_v60 }
  0xfe   :  { %v200_v48 = vpop.f32.mrf.mxu0 }
  0xff   :  { %v201_v49 = vadd.f32 %v200_v48, %v79_v46 }
 0x100   :  { %v202_v50 = vpop.f32.mrf.mxu0 }
 0x101   :  { %v203_v51 = vadd.f32 %v202_v50, %v83_v47  ;;  %v207_v52 = vmax.f32 %v201_v49, 0.0 }
 0x102   :  { %v204_v53 = vpop.f32.mrf.mxu0 }
 0x103   :  { %v208_v54 = vmax.f32 %v203_v51, 0.0  ;;  %v209_v57 = vpack.c.bf16 %v207_v52, %v207_v52 }
 0x104   :  { %v205_v55 = vpop.f32.mrf.mxu0 }
 0x105   :  { %v210_v56 = vpack.c.bf16 %v208_v54, %v208_v54 }
 0x107   :  { %378 = vmatprep.mubr.bf16.mxu1 %v210_v56 }
 0x108   :  { %379 = vmatmul.mubr.bf16.vlgmr.msra.gmra.mxu1 %v209_v57 }
 0x1c8   :  { %v579_v61 = vpop.f32.mrf.mxu1 }
 0x1ca   :  { %v580_v63 = vpop.f32.mrf.mxu1 }
 0x1cb   :  { %v581_v0 = vadd.f32 %v580_v63, %v579_v61 }
 0x1cc   :  { %v582_v1 = vpop.f32.mrf.mxu1 }
 0x1cd   :  { %v381_v2 = vadd.f32 %v581_v0, %v537_v62 }
 0x1ce   :  { %v583_v3 = vpop.f32.mrf.mxu1 }
 0x1cf   :  { %v386_v4 = vmax.f32 %v381_v2, 0.0 }
 0x1d1   :  { %v387_v5 = vpack.c.bf16 %v386_v4, %v386_v4 }
 0x1d3   :  { %611 = vmatmul.mubr.bf16.vlgmr.msra.gmra.mxu0 %v387_v5 }
 0x293   :  { %v493_v7 = vpop.f32.mrf.mxu0 }
 0x294   :  { %v494_v8 = vadd.f32 %v554_v6, %v493_v7 }
 0x295   :  { %v612_v9 = vpop.f32.mrf.mxu0 }
 0x296   :  { %v499_v10 = vmul.f32 0.5, %v494_v8 }
 0x297   :  { %v496_v11 = vpop.f32.mrf.mxu0 }
 0x298   :  { %672 = vtanh.f32 %v499_v10 }
 0x299   :  { %v613_v12 = vpop.f32.mrf.mxu0 }
 0x2a5   :  { %v673_v13 = vpop.eup %672 }
 0x2a6   :  { %v501_v14 = vadd.f32 1.0, %v673_v13 }
 0x2a8   :  { %v502_v15 = vmul.f32 0.5, %v501_v14 }
 0x2aa   :  { %504 = vst.msk [vmem:[#allocation7] sm:$0xff] %vm503_vm1, %v502_v15 }
 0x2ab   :  { %725 = shalt.err (!%p722_p0)
}
 0x2ac   :  { %514 = dma.vmem_to_hbm [thread:$0]  %s512_s5, 128, %s842_s7, [#allocation4]  }
 0x2ad   :  { %738 = dma.done.wait [#allocation4], 128  }
 0x2ae   :  { %739 = vsyncadd [#allocation4], 4294967168 }
 0x2af   :  { %518 = vsyncpa [#allocation3], 1 }
 0x2b0   :  { %519 = vsyncpa [#allocation6], 1 }
 0x2b1   :  { %520 = vsyncpa [#allocation4], 1 }

</bundles_post_ra>
